<compile_context>
chip_gen: v5e
topology: v5e:2x2
jax: 0.10.0
libtpu: 0.0.40
codegen_flags: <defaults>
</compile_context>

<pallas_src>
import math

import jax
import jax.numpy as jnp
from jax.experimental import pallas as pl
from jax.experimental.pallas import tpu as pltpu


def _copy_kernel(x_ref, o_ref):
    # Pure identity copy of the current lane-dense tile.
    o_ref[...] = x_ref[...]


def _plan_2d_copy(total: int, dtype) -> tuple:
    """Pick a lane-dense 2D view + tiling for a flat copy of `total` elements."""
    itemsize = jnp.dtype(dtype).itemsize

    # Prefer a wide, multiple-of-128 lane dimension that divides the total.
    lane = None
    for cand in (2048, 1024, 512, 256, 128):
        if total % cand == 0:
            lane = cand
            break

    if lane is not None:
        rows = total // lane
        target_bytes = 2 * 1024 * 1024  # ~2 MiB per buffer (safe on v5e/v6e/v7x)
        br = max(1, target_bytes // (lane * itemsize))
        if rows <= br:
            br = rows                      # full dim -> always a legal block
        else:
            br = max(8, (br // 8) * 8)     # multiple of 8 sublanes
        shape2d = (rows, lane)
        block = (br, lane)
        grid = (pl.cdiv(rows, br),)
        index_map = lambda i: (i, 0)
    else:
        # No multiple-of-128 factorization: single row, tile along lanes.
        shape2d = (1, total)
        lblk = min(total, 1024)            # ==total (full) or multiple of 128
        block = (1, lblk)
        grid = (pl.cdiv(total, lblk),)
        index_map = lambda i: (0, i)

    return shape2d, block, grid, index_map


def squeeze(x: jax.Array, dim: int) -> jax.Array:
    """Pallas equivalent of torch.Tensor.squeeze(dim)."""
    ndim = x.ndim
    if dim < 0:
        dim += ndim
    assert 0 <= dim < ndim, f"dim {dim} out of range for rank-{ndim} tensor"

    # torch.squeeze(dim) is a no-op when the dim is not size 1.
    if x.shape[dim] != 1:
        return x

    out_shape = tuple(s for i, s in enumerate(x.shape) if i != dim)
    total = math.prod(x.shape)
    if total == 0:
        # Empty tensor: nothing to copy, reshape is exact.
        return jnp.reshape(x, out_shape)

    shape2d, block, grid, index_map = _plan_2d_copy(total, x.dtype)

    # Layout plumbing only (free): present a lane-dense 2D slab to the kernel.
    x2d = jnp.reshape(x, shape2d)

    spec = pl.BlockSpec(block, index_map)

    y2d = pl.pallas_call(
        _copy_kernel,
        out_shape=jax.ShapeDtypeStruct(shape2d, x.dtype),
        grid_spec=pltpu.PrefetchScalarGridSpec(
            num_scalar_prefetch=0,
            grid=grid,
            in_specs=[spec],
            out_specs=spec,
        ),
        compiler_params=pltpu.CompilerParams(
            dimension_semantics=("parallel",),
            vmem_limit_bytes=32 * 1024 * 1024,  # blocks are ~2 MiB; plenty on all gens
        ),
    )(x2d)

    return jnp.reshape(y2d, out_shape)


if __name__ == "__main__":
    key = jax.random.PRNGKey(0)

    # Module config: dim=1 (NCHW input with a size-1 channel axis).
    dim = 1
    x = jax.random.normal(key, (2, 1, 16, 16), dtype=jnp.float32)

    y = jax.block_until_ready(squeeze(x, dim))
    y_ref = jnp.squeeze(x, axis=dim)
    assert y.shape == y_ref.shape == (2, 16, 16), (y.shape, y_ref.shape)
    assert jnp.array_equal(y, y_ref), "mismatch vs reference squeeze"

    # No-op path (dim not of size 1): returned unchanged, no kernel launch.
    x2 = jax.random.normal(key, (2, 4, 16, 16), dtype=jnp.float32)
    y2 = jax.block_until_ready(squeeze(x2, 1))
    assert y2.shape == x2.shape and jnp.array_equal(y2, x2)

    # Irregular total (no multiple-of-128 factor) -> lane-tiled fallback path.
    x3 = jax.random.normal(key, (3, 1, 5, 7), dtype=jnp.float32)
    y3 = jax.block_until_ready(squeeze(x3, 1))
    assert jnp.array_equal(y3, jnp.squeeze(x3, axis=1))

    # Rank-1 output path.
    x4 = jax.random.normal(key, (1, 10), dtype=jnp.float32)
    y4 = jax.block_until_ready(squeeze(x4, 0))
    assert y4.shape == (10,) and jnp.array_equal(y4, jnp.squeeze(x4, axis=0))

    print("KERNEL_OK")
</pallas_src>

<mosaic_0001>
module attributes {stable_mosaic.version = 11 : i64} {
  func.func @_copy_kernel(%arg0: i32, %arg1: memref<1x512xf32, #tpu.memory_space<vmem>>, %arg2: memref<1x512xf32, #tpu.memory_space<vmem>>) attributes {dimension_semantics = [#tpu.dimension_semantics<parallel>], iteration_bounds = array<i64: 1>, scalar_prefetch = 0 : i64, scratch_operands = 0 : i64, tpu.core_type = #tpu.core_type<tc>, window_params = [{transform_indices = @transform_0, window_bounds = array<i64: 1, 512>}, {transform_indices = @transform_1, window_bounds = array<i64: 1, 512>}]} {
    %c0 = arith.constant 0 : index
    %c0_0 = arith.constant 0 : index
    %0 = vector.load %arg1[%c0, %c0_0] : memref<1x512xf32, #tpu.memory_space<vmem>>, vector<1x512xf32>
    %c0_1 = arith.constant 0 : index
    %c0_2 = arith.constant 0 : index
    %1 = vector.load %arg2[%c0_1, %c0_2] : memref<1x512xf32, #tpu.memory_space<vmem>>, vector<1x512xf32>
    tpu.vector_store %arg2[%c0_1, %c0_2], %0 {strides = array<i32>} : memref<1x512xf32, #tpu.memory_space<vmem>>, vector<1x512xf32>,
    return
  }
  func.func @transform_0(%arg0: i32) -> (i32, i32) {
    %c0_i32 = arith.constant 0 : i32
    %c0_i32_0 = arith.constant 0 : i32
    return %arg0, %c0_i32 : i32, i32
  }
  func.func @transform_1(%arg0: i32) -> (i32, i32) {
    %c0_i32 = arith.constant 0 : i32
    %c0_i32_0 = arith.constant 0 : i32
    return %arg0, %c0_i32 : i32, i32
  }
}

</mosaic_0001>

<bundles_post_ra>
// kernel: tpu_custom_call.1
= control target key start
LH: loop header
LB: loop body
LE: loop exit
PB: predicated region body
PF: predicated region fallthrough
CT: control target
= control target key end

     0   :  { %6 = vsyncpa [#allocation3], 0  ;;  %s118_s0 = inlined_call_operand.hbm [shape: f32[1,512], index: 0, kind: input, shape index: {}]   ;;  %s119_s1 = inlined_call_operand.hbm [shape: f32[1,512], index: 1, kind: output, shape index: {}]  }
   0x1   :  { %7 = vsyncpa [#allocation4], 0  ;;  %s13_s8 = sshll.u32 %s118_s0, 4  ;;  %s100_s9 = smov [#allocation2]   ;;  %s14_s8 = int_to_ptr.hbm [resolvable:$true] %s13_s8 }
   0x2   :  { %s15_s10 = sshll.u32 %s100_s9, 4  ;;  %s16_s10 = int_to_ptr.vmem [resolvable:$true] %s15_s10 }
   0x3   :  { %18 = dma.hbm_to_vmem [thread:$0]  %s14_s8, 64, %s16_s10, [#allocation3]  }
   0x4   :  { %96 = dma.done.wait [#allocation3], 64  }
   0x5   :  { %97 = vsyncadd [#allocation3], 4294967232  ;;  %v24_v0 = vlaneseq  ;;  %s101_s11 = smov [#allocation5]   ;;  %s36_s15 = sshll.u32 %s119_s1, 4  ;;  %v23_v1 = vld [vmem:[#allocation2] sm:$0xf]  ;;  %s37_s15 = int_to_ptr.hbm [resolvable:$true] %s36_s15 }
   0x6   :  { %s34_s12 = sshll.u32 %s101_s11, 4  ;;  %s35_s12 = int_to_ptr.vmem [resolvable:$true] %s34_s12 }
   0x7   :  { %vm26_vm0 = vcmp.lt.s32.totalorder %v24_v0, 512 }
   0x8   :  { %28 = vst.msk [vmem:[#allocation5] sm:$0xf] %vm26_vm0, %v23_v1 }
   0x9   :  { %39 = dma.vmem_to_hbm [thread:$0]  %s35_s12, 64, %s37_s15, [#allocation4]  }
   0xa   :  { %98 = dma.done.wait [#allocation4], 64  }
   0xb   :  { %99 = vsyncadd [#allocation4], 4294967232 }
   0xc   :  { %44 = vsyncpa [#allocation3], 1 }
   0xd   :  { %45 = vsyncpa [#allocation4], 1 }

</bundles_post_ra>
